<compile_context>
chip_gen: v6e
topology: v6e:2x2x1
jax: 0.10.0
libtpu: 0.0.40
codegen_flags: <defaults>
</compile_context>

<pallas_src>
import jax
import jax.numpy as jnp
from jax.experimental import pallas as pl
from jax.experimental.pallas import tpu as pltpu


def _round_up(x, m):
    return ((x + m - 1) // m) * m


def _svm_matvec_kernel(k_ref, a_ref, o_ref, acc_ref):
    # k_ref: (tm, tn) tile of K, a_ref: (tn, 1) slice of alpha,
    # o_ref: (tm, 1) output tile, acc_ref: (tm, 1) f32 accumulator.
    k = pl.program_id(1)

    @pl.when(k == 0)
    def _():
        acc_ref[...] = jnp.zeros_like(acc_ref)

    acc_ref[...] += jnp.dot(
        k_ref[...], a_ref[...], preferred_element_type=jnp.float32
    )

    @pl.when(k == pl.num_programs(1) - 1)
    def _():
        o_ref[...] = acc_ref[...].astype(o_ref.dtype)


def kernel_svm_forward(K, alpha, *, tm=None, tn=None):
    """Computes K @ alpha with a Pallas TPU kernel.

    K:     (M, N) float32
    alpha: (N, 1) float32
    returns (M, 1) float32
    """
    M, N = K.shape
    assert alpha.shape == (N, 1), "alpha must be (n_samples, 1)"

    # ---- tile selection (bandwidth-bound: biggest tiles within VMEM budget) ----
    if tn is None:
        # Reduction tile: lane-aligned, capped so each K tile stays a few MiB.
        tn = min(_round_up(N, 128), 512)
    tn = _round_up(tn, 128)

    if tm is None:
        # Target ~8 MiB per K tile (the pipeline double-buffers it).  Together
        # with the double-buffered (tm, 1) output blocks, the (tm, 1) f32
        # accumulator and the tiny alpha slices this stays < ~24 MiB of live
        # VMEM — safe on v7x (64 MiB physical) and v5e/v6e (128 MiB).
        tm = max(128, (8 * 1024 * 1024) // (tn * 4))
        tm = min(tm, 4096)                     # bound lane-sparse (tm, 1) buffers
        tm = min(tm, _round_up(M, 128))        # don't over-pad small problems
    tm = _round_up(tm, 8)

    M_pad = _round_up(M, tm)
    N_pad = _round_up(N, tn)

    Kp = K if (M_pad, N_pad) == (M, N) else jnp.pad(
        K, ((0, M_pad - M), (0, N_pad - N)))
    ap = alpha if N_pad == N else jnp.pad(alpha, ((0, N_pad - N), (0, 0)))

    grid = (M_pad // tm, N_pad // tn)

    out = pl.pallas_call(
        _svm_matvec_kernel,
        out_shape=jax.ShapeDtypeStruct((M_pad, 1), jnp.float32),
        grid_spec=pltpu.PrefetchScalarGridSpec(
            num_scalar_prefetch=0,
            grid=grid,
            in_specs=[
                pl.BlockSpec((tm, tn), lambda i, k: (i, k)),   # K row/col tile
                pl.BlockSpec((tn, 1), lambda i, k: (k, 0)),    # alpha slice
            ],
            out_specs=pl.BlockSpec((tm, 1), lambda i, k: (i, 0)),
            scratch_shapes=[pltpu.VMEM((tm, 1), jnp.float32)],
        ),
        compiler_params=pltpu.CompilerParams(
            dimension_semantics=("parallel", "arbitrary"),
            vmem_limit_bytes=48 * 1024 * 1024,
        ),
        cost_estimate=pl.CostEstimate(
            flops=2 * M_pad * N_pad,
            transcendentals=0,
            bytes_accessed=M_pad * N_pad * 4 + N_pad * 4 + M_pad * 4,
        ),
    )(Kp, ap)

    return out[:M]


if __name__ == "__main__":
    # Small, deterministic problem: n_samples training points, K is the
    # (n_samples, n_samples) Gram matrix (same semantics as the module's
    # forward: K @ alpha).
    n_samples = 256

    key = jax.random.PRNGKey(0)
    k_key, a_key = jax.random.split(key)

    # Synthetic RBF-like Gram matrix (symmetric, PSD-ish).
    X = jax.random.normal(k_key, (n_samples, 16), dtype=jnp.float32)
    sq = jnp.sum(X * X, axis=1, keepdims=True)
    d2 = sq + sq.T - 2.0 * (X @ X.T)
    K = jnp.exp(-0.1 * d2).astype(jnp.float32)

    # The module initializes alpha = zeros(n_samples, 1); zeros make the matvec
    # trivially zero, so we draw a deterministic non-zero alpha of the same
    # shape/dtype to actually exercise the kernel.
    alpha = (0.01 * jax.random.normal(a_key, (n_samples, 1))).astype(jnp.float32)

    ref = K @ alpha

    # 1) Default (bandwidth-optimal) tiling.
    out = jax.block_until_ready(kernel_svm_forward(K, alpha))
    assert out.shape == (n_samples, 1)
    assert jnp.allclose(out, ref, atol=1e-5, rtol=1e-5), "mismatch (default tiles)"

    # 2) Forced multi-tile grid (2 row tiles x 2 reduction steps) to exercise
    #    the accumulator init / writeback path.
    out2 = jax.block_until_ready(kernel_svm_forward(K, alpha, tm=128, tn=128))
    assert jnp.allclose(out2, ref, atol=1e-5, rtol=1e-5), "mismatch (tiled grid)"

    # 3) Non-divisible sample count exercises the cdiv/padding path.
    K3, a3 = K[:200, :200], alpha[:200]
    out3 = jax.block_until_ready(kernel_svm_forward(K3, a3))
    assert out3.shape == (200, 1)
    assert jnp.allclose(out3, K3 @ a3, atol=1e-5, rtol=1e-5), "mismatch (padded)"

    print("KERNEL_OK")
</pallas_src>

<mosaic_0001>
module attributes {stable_mosaic.version = 11 : i64} {
  func.func @_svm_matvec_kernel(%arg0: i32, %arg1: i32, %arg2: memref<256x256xf32, #tpu.memory_space<vmem>>, %arg3: memref<256x1xf32, #tpu.memory_space<vmem>>, %arg4: memref<256x1xf32, #tpu.memory_space<vmem>>, %arg5: memref<256x1xf32, #tpu.memory_space<vmem>>) attributes {dimension_semantics = [#tpu.dimension_semantics<parallel>, #tpu.dimension_semantics<arbitrary>], iteration_bounds = array<i64: 1, 1>, scalar_prefetch = 0 : i64, scratch_operands = 1 : i64, tpu.core_type = #tpu.core_type<tc>, window_params = [{transform_indices = @transform_0, window_bounds = array<i64: 256, 256>}, {transform_indices = @transform_1, window_bounds = array<i64: 256, 1>}, {transform_indices = @transform_2, window_bounds = array<i64: 256, 1>}]} {
    %c0_i32 = arith.constant 0 : i32
    %0 = arith.cmpi eq, %arg1, %c0_i32 : i32
    %1 = arith.extui %0 : i1 to i32
    %c0_i32_0 = arith.constant 0 : i32
    %2 = arith.cmpi ne, %1, %c0_i32_0 : i32
    scf.if %2 {
      %cst_10 = arith.constant 0.000000e+00 : f32
      %12 = vector.broadcast %cst_10 : f32 to vector<256x1xf32>
      %c0_11 = arith.constant 0 : index
      %c0_12 = arith.constant 0 : index
      %13 = vector.load %arg5[%c0_11, %c0_12] : memref<256x1xf32, #tpu.memory_space<vmem>>, vector<256x1xf32>
      tpu.vector_store %arg5[%c0_11, %c0_12], %12 {strides = array<i32>} : memref<256x1xf32, #tpu.memory_space<vmem>>, vector<256x1xf32>,
    } else {
    }
    %c0 = arith.constant 0 : index
    %c0_1 = arith.constant 0 : index
    %3 = vector.load %arg5[%c0, %c0_1] : memref<256x1xf32, #tpu.memory_space<vmem>>, vector<256x1xf32>
    %c0_2 = arith.constant 0 : index
    %c0_3 = arith.constant 0 : index
    %4 = vector.load %arg2[%c0_2, %c0_3] : memref<256x256xf32, #tpu.memory_space<vmem>>, vector<256x256xf32>
    %c0_4 = arith.constant 0 : index
    %c0_5 = arith.constant 0 : index
    %5 = vector.load %arg3[%c0_4, %c0_5] : memref<256x1xf32, #tpu.memory_space<vmem>>, vector<256x1xf32>
    %cst = arith.constant dense<0.000000e+00> : vector<256x1xf32>
    %6 = tpu.matmul %4, %5, %cst {dimension_numbers = #tpu.dot_dimension_numbers<[1], [0], [0], [1], [0, 0, 1, 1], [], []>} : vector<256x256xf32>, vector<256x1xf32>, vector<256x1xf32> -> vector<256x1xf32>
    %7 = arith.addf %3, %6 : vector<256x1xf32>
    %c0_6 = arith.constant 0 : index
    %c0_7 = arith.constant 0 : index
    %8 = vector.load %arg5[%c0_6, %c0_7] : memref<256x1xf32, #tpu.memory_space<vmem>>, vector<256x1xf32>
    tpu.vector_store %arg5[%c0_6, %c0_7], %7 {strides = array<i32>} : memref<256x1xf32, #tpu.memory_space<vmem>>, vector<256x1xf32>,
    %c0_i32_8 = arith.constant 0 : i32
    %9 = arith.cmpi eq, %arg1, %c0_i32_8 : i32
    %10 = arith.extui %9 : i1 to i32
    %c0_i32_9 = arith.constant 0 : i32
    %11 = arith.cmpi ne, %10, %c0_i32_9 : i32
    scf.if %11 {
      %c0_10 = arith.constant 0 : index
      %c0_11 = arith.constant 0 : index
      %12 = vector.load %arg5[%c0_10, %c0_11] : memref<256x1xf32, #tpu.memory_space<vmem>>, vector<256x1xf32>
      %c0_12 = arith.constant 0 : index
      %c0_13 = arith.constant 0 : index
      %13 = vector.load %arg4[%c0_12, %c0_13] : memref<256x1xf32, #tpu.memory_space<vmem>>, vector<256x1xf32>
      tpu.vector_store %arg4[%c0_12, %c0_13], %12 {strides = array<i32>} : memref<256x1xf32, #tpu.memory_space<vmem>>, vector<256x1xf32>,
    } else {
    }
    return
  }
  func.func @transform_0(%arg0: i32, %arg1: i32) -> (i32, i32) {
    %c0_i32 = arith.constant 0 : i32
    return %arg0, %arg1 : i32, i32
  }
  func.func @transform_1(%arg0: i32, %arg1: i32) -> (i32, i32) {
    %c0_i32 = arith.constant 0 : i32
    %c0_i32_0 = arith.constant 0 : i32
    return %arg1, %c0_i32 : i32, i32
  }
  func.func @transform_2(%arg0: i32, %arg1: i32) -> (i32, i32) {
    %c0_i32 = arith.constant 0 : i32
    %c0_i32_0 = arith.constant 0 : i32
    return %arg0, %c0_i32 : i32, i32
  }
}

</mosaic_0001>

<bundles_post_ra>
// kernel: tpu_custom_call.1
= control target key start
LH: loop header
LB: loop body
LE: loop exit
PB: predicated region body
PF: predicated region fallthrough
CT: control target
= control target key end

     0   :  { %7 = vsyncpa [#allocation4], 0  ;;  %s642_s9 = smov [#allocation3]   ;;  %s1048_s0 = inlined_call_operand.hbm [shape: f32[256,256], index: 0, kind: input, shape index: {}]   ;;  %s1049_s1 = inlined_call_operand.vmem [shape: f32[256,1], index: 1, kind: input, shape index: {}]   ;;  %s1050_s2 = inlined_call_operand.vmem [shape: f32[256,1], index: 2, kind: output, shape index: {}]  }
   0x1   :  { %s13_s10 = sshll.u32 %s642_s9, 4  ;;  %s14_s10 = int_to_ptr.vmem [resolvable:$true] %s13_s10 }
   0x2   :  { %s628_s11 = scalar_lea.vmem %s14_s10, 8192  ;;  %p633_p1 = scmp.lt.s32.totalorder %s14_s10, %s14_s10 }
   0x3   :  { %p629_p0 = scmp.ne.s32.totalorder %s14_s10, %s628_s11  ;;  %p634_p2 = scmp.lt.s32.totalorder %s628_s11, %s628_s11 }
   0x5   :  { %p635_p3 = por %p634_p2, %p633_p1 }
   0x7   :  { %p636_p4 = pnand %p635_p3, %p629_p0 }
   0x9   :  { %639 = shalt.err (!%p636_p4)
}
   0xa   :  { %s643_s12 = smov 256   ;;  %s644_s13 = smov 16  }
   0xb   :  { %19 = dma.hbm_to_vmem [thread:$0]  %s1048_s0, 8192, %s14_s10, [#allocation4], %s643_s12, %s643_s12, %s644_s13  }
   0xc   :  { %640 = dma.done.wait [#allocation4], 8192  }
   0xd   :  { %641 = vsyncadd [#allocation4], 4294959104  ;;  %v645_v0 = vmov 0.0   ;;  %vm29_vm0 = vcmask 7168   ;;  %v173_v1 = vld [vmem:[%s1049_s1 + $0x78] sm:$0xff]  ;;  %v172_v2 = vld [vmem:[%s1049_s1 + $0x70] sm:$0xff] }
   0xe   :  { %190 = vmatprep.subr.mxu0 %v645_v0  ;;  %552 = vmatprep.subr.mxu1 %v645_v0  ;;  %30 = vst.msk [vmem:[#allocation2] sm:$0xff] %vm29_vm0, %v645_v0  ;;  %31 = vst.msk [vmem:[#allocation2 + $0x8] sm:$0xff] %vm29_vm0, %v645_v0  ;;  %v171_v3 = vld [vmem:[%s1049_s1 + $0x68] sm:$0xff]  ;;  %v170_v4 = vld [vmem:[%s1049_s1 + $0x60] sm:$0xff] }
   0xf   :  { %32 = vst.msk [vmem:[#allocation2 + $0x10] sm:$0xff] %vm29_vm0, %v645_v0  ;;  %33 = vst.msk [vmem:[#allocation2 + $0x18] sm:$0xff] %vm29_vm0, %v645_v0  ;;  %191 = vmatpush1.msra.mxu0 %v173_v1  ;;  %584 = vmatpush1.msra.mxu1 %v173_v1  ;;  %v169_v5 = vld [vmem:[%s1049_s1 + $0x58] sm:$0xff]  ;;  %v168_v6 = vld [vmem:[%s1049_s1 + $0x50] sm:$0xff] }
  0x10   :  { %34 = vst.msk [vmem:[#allocation2 + $0x20] sm:$0xff] %vm29_vm0, %v645_v0  ;;  %35 = vst.msk [vmem:[#allocation2 + $0x28] sm:$0xff] %vm29_vm0, %v645_v0  ;;  %192 = vmatprep.subr.mxu0 %v645_v0  ;;  %553 = vmatprep.subr.mxu1 %v645_v0  ;;  %v167_v7 = vld [vmem:[%s1049_s1 + $0x48] sm:$0xff]  ;;  %v166_v8 = vld [vmem:[%s1049_s1 + $0x40] sm:$0xff] }
  0x11   :  { %36 = vst.msk [vmem:[#allocation2 + $0x30] sm:$0xff] %vm29_vm0, %v645_v0  ;;  %37 = vst.msk [vmem:[#allocation2 + $0x38] sm:$0xff] %vm29_vm0, %v645_v0  ;;  %193 = vmatpush1.msra.mxu0 %v172_v2  ;;  %585 = vmatpush1.msra.mxu1 %v172_v2  ;;  %v165_v9 = vld [vmem:[%s1049_s1 + $0x38] sm:$0xff]  ;;  %v164_v10 = vld [vmem:[%s1049_s1 + $0x30] sm:$0xff] }
  0x12   :  { %38 = vst.msk [vmem:[#allocation2 + $0x40] sm:$0xff] %vm29_vm0, %v645_v0  ;;  %39 = vst.msk [vmem:[#allocation2 + $0x48] sm:$0xff] %vm29_vm0, %v645_v0  ;;  %194 = vmatprep.subr.mxu0 %v645_v0  ;;  %554 = vmatprep.subr.mxu1 %v645_v0  ;;  %v163_v11 = vld [vmem:[%s1049_s1 + $0x28] sm:$0xff]  ;;  %v162_v12 = vld [vmem:[%s1049_s1 + $0x20] sm:$0xff] }
  0x13   :  { %40 = vst.msk [vmem:[#allocation2 + $0x50] sm:$0xff] %vm29_vm0, %v645_v0  ;;  %41 = vst.msk [vmem:[#allocation2 + $0x58] sm:$0xff] %vm29_vm0, %v645_v0  ;;  %195 = vmatpush1.msra.mxu0 %v171_v3  ;;  %586 = vmatpush1.msra.mxu1 %v171_v3  ;;  %v161_v13 = vld [vmem:[%s1049_s1 + $0x18] sm:$0xff]  ;;  %v160_v14 = vld [vmem:[%s1049_s1 + $0x10] sm:$0xff] }
  0x14   :  { %42 = vst.msk [vmem:[#allocation2 + $0x60] sm:$0xff] %vm29_vm0, %v645_v0  ;;  %43 = vst.msk [vmem:[#allocation2 + $0x68] sm:$0xff] %vm29_vm0, %v645_v0  ;;  %196 = vmatprep.subr.mxu0 %v645_v0  ;;  %555 = vmatprep.subr.mxu1 %v645_v0  ;;  %v159_v15 = vld [vmem:[%s1049_s1 + $0x8] sm:$0xff]  ;;  %v158_v16 = vld [vmem:[%s1049_s1] sm:$0xff] }
  0x15   :  { %44 = vst.msk [vmem:[#allocation2 + $0x70] sm:$0xff] %vm29_vm0, %v645_v0  ;;  %45 = vst.msk [vmem:[#allocation2 + $0x78] sm:$0xff] %vm29_vm0, %v645_v0  ;;  %197 = vmatpush1.msra.mxu0 %v170_v4  ;;  %587 = vmatpush1.msra.mxu1 %v170_v4  ;;  %v189_v17 = vld [vmem:[%s1049_s1 + $0xf8] sm:$0xff]  ;;  %v188_v18 = vld [vmem:[%s1049_s1 + $0xf0] sm:$0xff] }
  0x16   :  { %46 = vst.msk [vmem:[#allocation2 + $0x80] sm:$0xff] %vm29_vm0, %v645_v0  ;;  %47 = vst.msk [vmem:[#allocation2 + $0x88] sm:$0xff] %vm29_vm0, %v645_v0  ;;  %198 = vmatprep.subr.mxu0 %v645_v0  ;;  %556 = vmatprep.subr.mxu1 %v645_v0  ;;  %v187_v19 = vld [vmem:[%s1049_s1 + $0xe8] sm:$0xff]  ;;  %v186_v20 = vld [vmem:[%s1049_s1 + $0xe0] sm:$0xff] }
  0x17   :  { %48 = vst.msk [vmem:[#allocation2 + $0x90] sm:$0xff] %vm29_vm0, %v645_v0  ;;  %49 = vst.msk [vmem:[#allocation2 + $0x98] sm:$0xff] %vm29_vm0, %v645_v0  ;;  %199 = vmatpush1.msra.mxu0 %v169_v5  ;;  %588 = vmatpush1.msra.mxu1 %v169_v5  ;;  %v185_v21 = vld [vmem:[%s1049_s1 + $0xd8] sm:$0xff]  ;;  %v184_v22 = vld [vmem:[%s1049_s1 + $0xd0] sm:$0xff] }
  0x18   :  { %50 = vst.msk [vmem:[#allocation2 + $0xa0] sm:$0xff] %vm29_vm0, %v645_v0  ;;  %51 = vst.msk [vmem:[#allocation2 + $0xa8] sm:$0xff] %vm29_vm0, %v645_v0  ;;  %200 = vmatprep.subr.mxu0 %v645_v0  ;;  %557 = vmatprep.subr.mxu1 %v645_v0  ;;  %v183_v23 = vld [vmem:[%s1049_s1 + $0xc8] sm:$0xff]  ;;  %v182_v24 = vld [vmem:[%s1049_s1 + $0xc0] sm:$0xff] }
  0x19   :  { %52 = vst.msk [vmem:[#allocation2 + $0xb0] sm:$0xff] %vm29_vm0, %v645_v0  ;;  %53 = vst.msk [vmem:[#allocation2 + $0xb8] sm:$0xff] %vm29_vm0, %v645_v0  ;;  %201 = vmatpush1.msra.mxu0 %v168_v6  ;;  %589 = vmatpush1.msra.mxu1 %v168_v6  ;;  %v181_v25 = vld [vmem:[%s1049_s1 + $0xb8] sm:$0xff]  ;;  %v180_v26 = vld [vmem:[%s1049_s1 + $0xb0] sm:$0xff] }
  0x1a   :  { %54 = vst.msk [vmem:[#allocation2 + $0xc0] sm:$0xff] %vm29_vm0, %v645_v0  ;;  %55 = vst.msk [vmem:[#allocation2 + $0xc8] sm:$0xff] %vm29_vm0, %v645_v0  ;;  %202 = vmatprep.subr.mxu0 %v645_v0  ;;  %558 = vmatprep.subr.mxu1 %v645_v0  ;;  %v179_v27 = vld [vmem:[%s1049_s1 + $0xa8] sm:$0xff]  ;;  %v178_v28 = vld [vmem:[%s1049_s1 + $0xa0] sm:$0xff] }
  0x1b   :  { %56 = vst.msk [vmem:[#allocation2 + $0xd0] sm:$0xff] %vm29_vm0, %v645_v0  ;;  %57 = vst.msk [vmem:[#allocation2 + $0xd8] sm:$0xff] %vm29_vm0, %v645_v0  ;;  %203 = vmatpush1.msra.mxu0 %v167_v7  ;;  %590 = vmatpush1.msra.mxu1 %v167_v7  ;;  %v177_v29 = vld [vmem:[%s1049_s1 + $0x98] sm:$0xff]  ;;  %v176_v30 = vld [vmem:[%s1049_s1 + $0x90] sm:$0xff] }
  0x1c   :  { %58 = vst.msk [vmem:[#allocation2 + $0xe0] sm:$0xff] %vm29_vm0, %v645_v0  ;;  %59 = vst.msk [vmem:[#allocation2 + $0xe8] sm:$0xff] %vm29_vm0, %v645_v0  ;;  %204 = vmatprep.subr.mxu0 %v645_v0  ;;  %559 = vmatprep.subr.mxu1 %v645_v0  ;;  %v175_v31 = vld [vmem:[%s1049_s1 + $0x88] sm:$0xff]  ;;  %v174_v32 = vld [vmem:[%s1049_s1 + $0x80] sm:$0xff] }
  0x1d   :  { %60 = vst.msk [vmem:[#allocation2 + $0xf0] sm:$0xff] %vm29_vm0, %v645_v0  ;;  %61 = vst.msk [vmem:[#allocation2 + $0xf8] sm:$0xff] %vm29_vm0, %v645_v0  ;;  %205 = vmatpush1.msra.mxu0 %v166_v8  ;;  %591 = vmatpush1.msra.mxu1 %v166_v8  ;;  %v95_v33 = vld [vmem:[#allocation3 + $0x8] sm:$0xff]  ;;  %v94_v35 = vld [vmem:[#allocation3] sm:$0xff] }
  0x1e   :  { %206 = vmatprep.subr.mxu0 %v645_v0  ;;  %560 = vmatprep.subr.mxu1 %v645_v0  ;;  %v127_v34 = vld [vmem:[#allocation3 + $0x108] sm:$0xff]  ;;  %v126_v36 = vld [vmem:[#allocation3 + $0x100] sm:$0xff]  ;;  %v97_v37 = vld [vmem:[#allocation3 + $0x18] sm:$0xff] }
  0x1f   :  { %207 = vmatpush1.msra.mxu0 %v165_v9  ;;  %592 = vmatpush1.msra.mxu1 %v165_v9  ;;  %v129_v38 = vld [vmem:[#allocation3 + $0x118] sm:$0xff]  ;;  %v96_v39 = vld [vmem:[#allocation3 + $0x10] sm:$0xff]  ;;  %v99_v41 = vld [vmem:[#allocation3 + $0x28] sm:$0xff] }
  0x20   :  { %208 = vmatprep.subr.mxu0 %v645_v0  ;;  %561 = vmatprep.subr.mxu1 %v645_v0  ;;  %v128_v40 = vld [vmem:[#allocation3 + $0x110] sm:$0xff]  ;;  %v131_v42 = vld [vmem:[#allocation3 + $0x128] sm:$0xff]  ;;  %v98_v43 = vld [vmem:[#allocation3 + $0x20] sm:$0xff] }
  0x21   :  { %209 = vmatpush1.msra.mxu0 %v164_v10  ;;  %593 = vmatpush1.msra.mxu1 %v164_v10  ;;  %v130_v44 = vld [vmem:[#allocation3 + $0x120] sm:$0xff]  ;;  %v101_v45 = vld [vmem:[#allocation3 + $0x38] sm:$0xff]  ;;  %v100_v47 = vld [vmem:[#allocation3 + $0x30] sm:$0xff] }
  0x22   :  { %210 = vmatprep.subr.mxu0 %v645_v0  ;;  %562 = vmatprep.subr.mxu1 %v645_v0  ;;  %v133_v46 = vld [vmem:[#allocation3 + $0x138] sm:$0xff]  ;;  %v132_v48 = vld [vmem:[#allocation3 + $0x130] sm:$0xff]  ;;  %v103_v49 = vld [vmem:[#allocation3 + $0x48] sm:$0xff] }
  0x23   :  { %211 = vmatpush1.msra.mxu0 %v163_v11  ;;  %594 = vmatpush1.msra.mxu1 %v163_v11  ;;  %v135_v50 = vld [vmem:[#allocation3 + $0x148] sm:$0xff]  ;;  %v102_v51 = vld [vmem:[#allocation3 + $0x40] sm:$0xff]  ;;  %v105_v53 = vld [vmem:[#allocation3 + $0x58] sm:$0xff] }
  0x24   :  { %212 = vmatprep.subr.mxu0 %v645_v0  ;;  %563 = vmatprep.subr.mxu1 %v645_v0  ;;  %v134_v52 = vld [vmem:[#allocation3 + $0x140] sm:$0xff]  ;;  %v137_v54 = vld [vmem:[#allocation3 + $0x158] sm:$0xff]  ;;  %v104_v55 = vld [vmem:[#allocation3 + $0x50] sm:$0xff] }
  0x25   :  { %213 = vmatpush1.msra.mxu0 %v162_v12  ;;  %595 = vmatpush1.msra.mxu1 %v162_v12  ;;  %v136_v56 = vld [vmem:[#allocation3 + $0x150] sm:$0xff]  ;;  %v107_v57 = vld [vmem:[#allocation3 + $0x68] sm:$0xff]  ;;  %v106_v59 = vld [vmem:[#allocation3 + $0x60] sm:$0xff] }
  0x26   :  { %214 = vmatprep.subr.mxu0 %v645_v0  ;;  %564 = vmatprep.subr.mxu1 %v645_v0  ;;  %v139_v58 = vld [vmem:[#allocation3 + $0x168] sm:$0xff]  ;;  %v138_v60 = vld [vmem:[#allocation3 + $0x160] sm:$0xff]  ;;  %v109_v61 = vld [vmem:[#allocation3 + $0x78] sm:$0xff] }
  0x27   :  { %215 = vmatpush1.msra.mxu0 %v161_v13  ;;  %596 = vmatpush1.msra.mxu1 %v161_v13  ;;  %v141_v62 = vld [vmem:[#allocation3 + $0x178] sm:$0xff]  ;;  %v108_v63 = vld [vmem:[#allocation3 + $0x70] sm:$0xff]  ;;  %v111_v1 = vld [vmem:[#allocation3 + $0x88] sm:$0xff] }
  0x28   :  { %216 = vmatprep.subr.mxu0 %v645_v0  ;;  %565 = vmatprep.subr.mxu1 %v645_v0  ;;  %v143_v2 = vld [vmem:[#allocation3 + $0x188] sm:$0xff]  ;;  %v110_v3 = vld [vmem:[#allocation3 + $0x80] sm:$0xff]  ;;  %v113_v5 = vld [vmem:[#allocation3 + $0x98] sm:$0xff] }
  0x29   :  { %217 = vmatpush1.msra.mxu0 %v160_v14  ;;  %597 = vmatpush1.msra.mxu1 %v160_v14  ;;  %v142_v4 = vld [vmem:[#allocation3 + $0x180] sm:$0xff]  ;;  %v145_v6 = vld [vmem:[#allocation3 + $0x198] sm:$0xff]  ;;  %v112_v7 = vld [vmem:[#allocation3 + $0x90] sm:$0xff] }
  0x2a   :  { %218 = vmatprep.subr.mxu0 %v645_v0  ;;  %566 = vmatprep.subr.mxu1 %v645_v0  ;;  %v144_v8 = vld [vmem:[#allocation3 + $0x190] sm:$0xff]  ;;  %v115_v9 = vld [vmem:[#allocation3 + $0xa8] sm:$0xff]  ;;  %v114_v11 = vld [vmem:[#allocation3 + $0xa0] sm:$0xff] }
  0x2b   :  { %219 = vmatpush1.msra.mxu0 %v159_v15  ;;  %598 = vmatpush1.msra.mxu1 %v159_v15  ;;  %v147_v10 = vld [vmem:[#allocation3 + $0x1a8] sm:$0xff]  ;;  %v146_v12 = vld [vmem:[#allocation3 + $0x1a0] sm:$0xff]  ;;  %v117_v13 = vld [vmem:[#allocation3 + $0xb8] sm:$0xff] }
  0x2c   :  { %220 = vmatprep.subr.mxu0 %v645_v0  ;;  %567 = vmatprep.subr.mxu1 %v645_v0  ;;  %v149_v14 = vld [vmem:[#allocation3 + $0x1b8] sm:$0xff]  ;;  %v116_v15 = vld [vmem:[#allocation3 + $0xb0] sm:$0xff] }
  0x2d   :  { %221 = vmatpush1.msra.mxu0 %v158_v16  ;;  %599 = vmatpush1.msra.mxu1 %v158_v16  ;;  %v148_v16 = vld [vmem:[#allocation3 + $0x1b0] sm:$0xff] }
  0x2e   :  { %222 = vmatprep.subr.mxu0 %v645_v0  ;;  %568 = vmatprep.subr.mxu1 %v645_v0 }
  0x2f   :  { %223 = vmatpush2.msra.mxu0 %v189_v17  ;;  %600 = vmatpush2.msra.mxu1 %v189_v17  ;;  %v119_v17 = vld [vmem:[#allocation3 + $0xc8] sm:$0xff] }
  0x30   :  { %224 = vmatprep.subr.mxu0 %v645_v0  ;;  %569 = vmatprep.subr.mxu1 %v645_v0 }
  0x31   :  { %225 = vmatpush2.msra.mxu0 %v188_v18  ;;  %601 = vmatpush2.msra.mxu1 %v188_v18  ;;  %v151_v18 = vld [vmem:[#allocation3 + $0x1c8] sm:$0xff] }
  0x32   :  { %226 = vmatprep.subr.mxu0 %v645_v0  ;;  %570 = vmatprep.subr.mxu1 %v645_v0 }
  0x33   :  { %227 = vmatpush2.msra.mxu0 %v187_v19  ;;  %602 = vmatpush2.msra.mxu1 %v187_v19  ;;  %v118_v19 = vld [vmem:[#allocation3 + $0xc0] sm:$0xff] }
  0x34   :  { %228 = vmatprep.subr.mxu0 %v645_v0  ;;  %571 = vmatprep.subr.mxu1 %v645_v0 }
  0x35   :  { %229 = vmatpush2.msra.mxu0 %v186_v20  ;;  %603 = vmatpush2.msra.mxu1 %v186_v20  ;;  %v150_v20 = vld [vmem:[#allocation3 + $0x1c0] sm:$0xff] }
  0x36   :  { %230 = vmatprep.subr.mxu0 %v645_v0  ;;  %572 = vmatprep.subr.mxu1 %v645_v0 }
  0x37   :  { %231 = vmatpush2.msra.mxu0 %v185_v21  ;;  %604 = vmatpush2.msra.mxu1 %v185_v21  ;;  %v121_v21 = vld [vmem:[#allocation3 + $0xd8] sm:$0xff] }
  0x38   :  { %232 = vmatprep.subr.mxu0 %v645_v0  ;;  %573 = vmatprep.subr.mxu1 %v645_v0 }
  0x39   :  { %233 = vmatpush2.msra.mxu0 %v184_v22  ;;  %605 = vmatpush2.msra.mxu1 %v184_v22  ;;  %v153_v22 = vld [vmem:[#allocation3 + $0x1d8] sm:$0xff] }
  0x3a   :  { %234 = vmatprep.subr.mxu0 %v645_v0  ;;  %574 = vmatprep.subr.mxu1 %v645_v0 }
  0x3b   :  { %235 = vmatpush2.msra.mxu0 %v183_v23  ;;  %606 = vmatpush2.msra.mxu1 %v183_v23  ;;  %v120_v23 = vld [vmem:[#allocation3 + $0xd0] sm:$0xff] }
  0x3c   :  { %236 = vmatprep.subr.mxu0 %v645_v0  ;;  %575 = vmatprep.subr.mxu1 %v645_v0 }
  0x3d   :  { %237 = vmatpush2.msra.mxu0 %v182_v24  ;;  %607 = vmatpush2.msra.mxu1 %v182_v24  ;;  %v152_v24 = vld [vmem:[#allocation3 + $0x1d0] sm:$0xff] }
  0x3e   :  { %238 = vmatprep.subr.mxu0 %v645_v0  ;;  %576 = vmatprep.subr.mxu1 %v645_v0 }
  0x3f   :  { %239 = vmatpush2.msra.mxu0 %v181_v25  ;;  %608 = vmatpush2.msra.mxu1 %v181_v25  ;;  %v123_v25 = vld [vmem:[#allocation3 + $0xe8] sm:$0xff] }
  0x40   :  { %240 = vmatprep.subr.mxu0 %v645_v0  ;;  %577 = vmatprep.subr.mxu1 %v645_v0 }
  0x41   :  { %241 = vmatpush2.msra.mxu0 %v180_v26  ;;  %609 = vmatpush2.msra.mxu1 %v180_v26  ;;  %v155_v26 = vld [vmem:[#allocation3 + $0x1e8] sm:$0xff] }
  0x42   :  { %242 = vmatprep.subr.mxu0 %v645_v0  ;;  %578 = vmatprep.subr.mxu1 %v645_v0 }
  0x43   :  { %243 = vmatpush2.msra.mxu0 %v179_v27  ;;  %610 = vmatpush2.msra.mxu1 %v179_v27  ;;  %v122_v27 = vld [vmem:[#allocation3 + $0xe0] sm:$0xff] }
  0x44   :  { %244 = vmatprep.subr.mxu0 %v645_v0  ;;  %579 = vmatprep.subr.mxu1 %v645_v0 }
  0x45   :  { %245 = vmatpush2.msra.mxu0 %v178_v28  ;;  %611 = vmatpush2.msra.mxu1 %v178_v28  ;;  %v154_v28 = vld [vmem:[#allocation3 + $0x1e0] sm:$0xff] }
  0x46   :  { %246 = vmatprep.subr.mxu0 %v645_v0  ;;  %580 = vmatprep.subr.mxu1 %v645_v0 }
  0x47   :  { %247 = vmatpush2.msra.mxu0 %v177_v29  ;;  %612 = vmatpush2.msra.mxu1 %v177_v29  ;;  %v125_v29 = vld [vmem:[#allocation3 + $0xf8] sm:$0xff] }
  0x48   :  { %248 = vmatprep.subr.mxu0 %v645_v0  ;;  %581 = vmatprep.subr.mxu1 %v645_v0 }
  0x49   :  { %249 = vmatpush2.msra.mxu0 %v176_v30  ;;  %613 = vmatpush2.msra.mxu1 %v176_v30  ;;  %v157_v30 = vld [vmem:[#allocation3 + $0x1f8] sm:$0xff] }
  0x4a   :  { %250 = vmatprep.subr.mxu0 %v645_v0  ;;  %582 = vmatprep.subr.mxu1 %v645_v0 }
  0x4b   :  { %251 = vmatpush2.msra.mxu0 %v175_v31  ;;  %614 = vmatpush2.msra.mxu1 %v175_v31  ;;  %v124_v31 = vld [vmem:[#allocation3 + $0xf0] sm:$0xff] }
  0x4c   :  { %252 = vmatprep.subr.mxu0 %v645_v0  ;;  %583 = vmatprep.subr.mxu1 %v645_v0  ;;  %v140_v0 = vld [vmem:[#allocation3 + $0x170] sm:$0xff] }
  0x4d   :  { %253 = vmatpush2.msra.mxu0 %v174_v32  ;;  %615 = vmatpush2.msra.mxu1 %v174_v32  ;;  %v156_v32 = vld [vmem:[#allocation3 + $0x1f0] sm:$0xff] }
  0x4e   :  { %254 = vmatprep.mubr.f32.mxu0 %v95_v33  ;;  %334 = vmatprep.mubr.f32.mxu1 %v127_v34  ;;  %v62_v33 = vld [vmem:[#allocation2] sm:$0xff] }
  0x4f   :  { %255 = vmatmul.mubr.f32.vlgmr.msra.gmra.mxu0 %v94_v35  ;;  %335 = vmatmul.mubr.f32.vlgmr.msra.gmra.mxu1 %v126_v36  ;;  %v78_v34 = vld [vmem:[#allocation2 + $0x80] sm:$0xff] }
  0x50   :  { %259 = vmatprep.mubr.f32.mxu0 %v97_v37  ;;  %339 = vmatprep.mubr.f32.mxu1 %v129_v38 }
  0x53   :  { %260 = vmatmul.mubr.f32.gmra.mxu0 %v96_v39  ;;  %340 = vmatmul.mubr.f32.gmra.mxu1 %v128_v40 }
  0x54   :  { %264 = vmatprep.mubr.f32.mxu0 %v99_v41  ;;  %344 = vmatprep.mubr.f32.mxu1 %v131_v42  ;;  %v63_v41 = vld [vmem:[#allocation2 + $0x8] sm:$0xff] }
  0x55   :  { %v79_v42 = vld [vmem:[#allocation2 + $0x88] sm:$0xff] }
  0x57   :  { %265 = vmatmul.mubr.f32.gmra.mxu0 %v98_v43  ;;  %345 = vmatmul.mubr.f32.gmra.mxu1 %v130_v44 }
  0x58   :  { %269 = vmatprep.mubr.f32.mxu0 %v101_v45  ;;  %349 = vmatprep.mubr.f32.mxu1 %v133_v46 }
  0x5b   :  { %270 = vmatmul.mubr.f32.gmra.mxu0 %v100_v47  ;;  %350 = vmatmul.mubr.f32.gmra.mxu1 %v132_v48 }
  0x5c   :  { %274 = vmatprep.mubr.f32.mxu0 %v103_v49  ;;  %354 = vmatprep.mubr.f32.mxu1 %v135_v50  ;;  %v64_v49 = vld [vmem:[#allocation2 + $0x10] sm:$0xff] }
  0x5d   :  { %v80_v50 = vld [vmem:[#allocation2 + $0x90] sm:$0xff] }
  0x5f   :  { %275 = vmatmul.mubr.f32.gmra.mxu0 %v102_v51  ;;  %355 = vmatmul.mubr.f32.gmra.mxu1 %v134_v52 }
  0x60   :  { %279 = vmatprep.mubr.f32.mxu0 %v105_v53  ;;  %359 = vmatprep.mubr.f32.mxu1 %v137_v54 }
  0x63   :  { %280 = vmatmul.mubr.f32.gmra.mxu0 %v104_v55  ;;  %360 = vmatmul.mubr.f32.gmra.mxu1 %v136_v56  ;;  %v65_v55 = vld [vmem:[#allocation2 + $0x18] sm:$0xff] }
  0x64   :  { %284 = vmatprep.mubr.f32.mxu0 %v107_v57  ;;  %364 = vmatprep.mubr.f32.mxu1 %v139_v58 }
  0x67   :  { %285 = vmatmul.mubr.f32.gmra.mxu0 %v106_v59  ;;  %365 = vmatmul.mubr.f32.gmra.mxu1 %v138_v60  ;;  %v81_v60 = vld [vmem:[#allocation2 + $0x98] sm:$0xff] }
  0x68   :  { %289 = vmatprep.mubr.f32.mxu0 %v109_v61  ;;  %369 = vmatprep.mubr.f32.mxu1 %v141_v62 }
  0x6b   :  { %290 = vmatmul.mubr.f32.gmra.mxu0 %v108_v63  ;;  %370 = vmatmul.mubr.f32.gmra.mxu1 %v140_v0 }
  0x6c   :  { %294 = vmatprep.mubr.f32.mxu0 %v111_v1  ;;  %374 = vmatprep.mubr.f32.mxu1 %v143_v2  ;;  %v66_v1 = vld [vmem:[#allocation2 + $0x20] sm:$0xff] }
  0x6f   :  { %295 = vmatmul.mubr.f32.gmra.mxu0 %v110_v3  ;;  %375 = vmatmul.mubr.f32.gmra.mxu1 %v142_v4 }
  0x70   :  { %299 = vmatprep.mubr.f32.mxu0 %v113_v5  ;;  %379 = vmatprep.mubr.f32.mxu1 %v145_v6  ;;  %v82_v6 = vld [vmem:[#allocation2 + $0xa0] sm:$0xff] }
  0x73   :  { %300 = vmatmul.mubr.f32.gmra.mxu0 %v112_v7  ;;  %380 = vmatmul.mubr.f32.gmra.mxu1 %v144_v8 }
  0x74   :  { %304 = vmatprep.mubr.f32.mxu0 %v115_v9  ;;  %384 = vmatprep.mubr.f32.mxu1 %v147_v10 }
  0x77   :  { %305 = vmatmul.mubr.f32.gmra.mxu0 %v114_v11  ;;  %385 = vmatmul.mubr.f32.gmra.mxu1 %v146_v12  ;;  %v67_v11 = vld [vmem:[#allocation2 + $0x28] sm:$0xff] }
  0x78   :  { %309 = vmatprep.mubr.f32.mxu0 %v117_v13  ;;  %389 = vmatprep.mubr.f32.mxu1 %v149_v14 }
  0x7b   :  { %310 = vmatmul.mubr.f32.gmra.mxu0 %v116_v15  ;;  %390 = vmatmul.mubr.f32.gmra.mxu1 %v148_v16  ;;  %v83_v16 = vld [vmem:[#allocation2 + $0xa8] sm:$0xff] }
  0x7c   :  { %314 = vmatprep.mubr.f32.mxu0 %v119_v17  ;;  %394 = vmatprep.mubr.f32.mxu1 %v151_v18 }
  0x7f   :  { %315 = vmatmul.mubr.f32.gmra.mxu0 %v118_v19  ;;  %395 = vmatmul.mubr.f32.gmra.mxu1 %v150_v20 }
  0x80   :  { %319 = vmatprep.mubr.f32.mxu0 %v121_v21  ;;  %399 = vmatprep.mubr.f32.mxu1 %v153_v22  ;;  %v68_v21 = vld [vmem:[#allocation2 + $0x30] sm:$0xff] }
  0x83   :  { %320 = vmatmul.mubr.f32.gmra.mxu0 %v120_v23  ;;  %400 = vmatmul.mubr.f32.gmra.mxu1 %v152_v24 }
  0x84   :  { %324 = vmatprep.mubr.f32.mxu0 %v123_v25  ;;  %404 = vmatprep.mubr.f32.mxu1 %v155_v26  ;;  %v84_v26 = vld [vmem:[#allocation2 + $0xb0] sm:$0xff] }
  0x87   :  { %325 = vmatmul.mubr.f32.gmra.mxu0 %v122_v27  ;;  %405 = vmatmul.mubr.f32.gmra.mxu1 %v154_v28 }
  0x88   :  { %329 = vmatprep.mubr.f32.mxu0 %v125_v29  ;;  %409 = vmatprep.mubr.f32.mxu1 %v157_v30 }
  0x8b   :  { %330 = vmatmul.mubr.f32.gmra.mxu0 %v124_v31  ;;  %410 = vmatmul.mubr.f32.gmra.mxu1 %v156_v32  ;;  %v69_v31 = vld [vmem:[#allocation2 + $0x38] sm:$0xff] }
 0x10f   :  { %v256_v35 = vpop.f32.mrf.mxu0  ;;  %v336_v36 = vpop.f32.mrf.mxu1 }
 0x110   :  { %v415_v37 = vadd.f32 %v256_v35, %v62_v33  ;;  %v431_v38 = vadd.f32 %v336_v36, %v78_v34  ;;  %v85_v36 = vld [vmem:[#allocation2 + $0xb8] sm:$0xff] }
 0x111   :  { %v258_v39 = vpop.f32.mrf.mxu0  ;;  %v338_v40 = vpop.f32.mrf.mxu1 }
 0x112   :  { %448 = vst.msk [vmem:[#allocation2] sm:$0xff] %vm29_vm0, %v415_v37  ;;  %464 = vst.msk [vmem:[#allocation2 + $0x80] sm:$0xff] %vm29_vm0, %v431_v38 }
 0x113   :  { %v261_v43 = vpop.f32.mrf.mxu0  ;;  %v341_v44 = vpop.f32.mrf.mxu1 }
 0x114   :  { %v416_v45 = vadd.f32 %v261_v43, %v63_v41  ;;  %v432_v46 = vadd.f32 %v341_v44, %v79_v42  ;;  %v70_v41 = vld [vmem:[#allocation2 + $0x40] sm:$0xff] }
 0x115   :  { %v263_v47 = vpop.f32.mrf.mxu0  ;;  %v343_v48 = vpop.f32.mrf.mxu1 }
 0x116   :  { %449 = vst.msk [vmem:[#allocation2 + $0x8] sm:$0xff] %vm29_vm0, %v416_v45  ;;  %465 = vst.msk [vmem:[#allocation2 + $0x88] sm:$0xff] %vm29_vm0, %v432_v46  ;;  %v86_v46 = vld [vmem:[#allocation2 + $0xc0] sm:$0xff] }
 0x117   :  { %v266_v51 = vpop.f32.mrf.mxu0  ;;  %v346_v52 = vpop.f32.mrf.mxu1 }
 0x118   :  { %v417_v53 = vadd.f32 %v266_v51, %v64_v49  ;;  %v433_v54 = vadd.f32 %v346_v52, %v80_v50  ;;  %v71_v51 = vld [vmem:[#allocation2 + $0x48] sm:$0xff] }
 0x119   :  { %v483_v56 = vld [vmem:[#allocation2] sm:$0xff]  ;;  %v268_v58 = vpop.f32.mrf.mxu0  ;;  %v348_v59 = vpop.f32.mrf.mxu1 }
 0x11a   :  { %v499_v57 = vld [vmem:[#allocation2 + $0x80] sm:$0xff]  ;;  %515 = vst.msk [vmem:[%s1050_s2] sm:$0xff] %vm29_vm0, %v483_v56  ;;  %450 = vst.msk [vmem:[#allocation2 + $0x10] sm:$0xff] %vm29_vm0, %v417_v53  ;;  %v87_v56 = vld [vmem:[#allocation2 + $0xc8] sm:$0xff] }
 0x11b   :  { %531 = vst.msk [vmem:[%s1050_s2 + $0x80] sm:$0xff] %vm29_vm0, %v499_v57  ;;  %466 = vst.msk [vmem:[#allocation2 + $0x90] sm:$0xff] %vm29_vm0, %v433_v54  ;;  %v271_v61 = vpop.f32.mrf.mxu0  ;;  %v351_v62 = vpop.f32.mrf.mxu1 }
 0x11c   :  { %v418_v63 = vadd.f32 %v271_v61, %v65_v55  ;;  %v434_v0 = vadd.f32 %v351_v62, %v81_v60  ;;  %v72_v61 = vld [vmem:[#allocation2 + $0x50] sm:$0xff] }
 0x11d   :  { %v484_v2 = vld [vmem:[#allocation2 + $0x8] sm:$0xff]  ;;  %v273_v4 = vpop.f32.mrf.mxu0  ;;  %v353_v5 = vpop.f32.mrf.mxu1 }
 0x11e   :  { %v500_v3 = vld [vmem:[#allocation2 + $0x88] sm:$0xff]  ;;  %516 = vst.msk [vmem:[%s1050_s2 + $0x8] sm:$0xff] %vm29_vm0, %v484_v2  ;;  %451 = vst.msk [vmem:[#allocation2 + $0x18] sm:$0xff] %vm29_vm0, %v418_v63  ;;  %v88_v2 = vld [vmem:[#allocation2 + $0xd0] sm:$0xff] }
 0x11f   :  { %532 = vst.msk [vmem:[%s1050_s2 + $0x88] sm:$0xff] %vm29_vm0, %v500_v3  ;;  %467 = vst.msk [vmem:[#allocation2 + $0x98] sm:$0xff] %vm29_vm0, %v434_v0  ;;  %v276_v7 = vpop.f32.mrf.mxu0  ;;  %v356_v8 = vpop.f32.mrf.mxu1 }
 0x120   :  { %v419_v9 = vadd.f32 %v276_v7, %v66_v1  ;;  %v435_v10 = vadd.f32 %v356_v8, %v82_v6  ;;  %v73_v7 = vld [vmem:[#allocation2 + $0x58] sm:$0xff] }
 0x121   :  { %v485_v12 = vld [vmem:[#allocation2 + $0x10] sm:$0xff]  ;;  %v278_v14 = vpop.f32.mrf.mxu0  ;;  %v358_v15 = vpop.f32.mrf.mxu1 }
 0x122   :  { %v501_v13 = vld [vmem:[#allocation2 + $0x90] sm:$0xff]  ;;  %517 = vst.msk [vmem:[%s1050_s2 + $0x10] sm:$0xff] %vm29_vm0, %v485_v12  ;;  %452 = vst.msk [vmem:[#allocation2 + $0x20] sm:$0xff] %vm29_vm0, %v419_v9  ;;  %v89_v12 = vld [vmem:[#allocation2 + $0xd8] sm:$0xff] }
 0x123   :  { %533 = vst.msk [vmem:[%s1050_s2 + $0x90] sm:$0xff] %vm29_vm0, %v501_v13  ;;  %468 = vst.msk [vmem:[#allocation2 + $0xa0] sm:$0xff] %vm29_vm0, %v435_v10  ;;  %v281_v17 = vpop.f32.mrf.mxu0  ;;  %v361_v18 = vpop.f32.mrf.mxu1 }
 0x124   :  { %v420_v19 = vadd.f32 %v281_v17, %v67_v11  ;;  %v436_v20 = vadd.f32 %v361_v18, %v83_v16  ;;  %v74_v17 = vld [vmem:[#allocation2 + $0x60] sm:$0xff] }
 0x125   :  { %v486_v22 = vld [vmem:[#allocation2 + $0x18] sm:$0xff]  ;;  %v283_v24 = vpop.f32.mrf.mxu0  ;;  %v363_v25 = vpop.f32.mrf.mxu1 }
 0x126   :  { %v502_v23 = vld [vmem:[#allocation2 + $0x98] sm:$0xff]  ;;  %518 = vst.msk [vmem:[%s1050_s2 + $0x18] sm:$0xff] %vm29_vm0, %v486_v22  ;;  %453 = vst.msk [vmem:[#allocation2 + $0x28] sm:$0xff] %vm29_vm0, %v420_v19  ;;  %v90_v22 = vld [vmem:[#allocation2 + $0xe0] sm:$0xff] }
 0x127   :  { %534 = vst.msk [vmem:[%s1050_s2 + $0x98] sm:$0xff] %vm29_vm0, %v502_v23  ;;  %469 = vst.msk [vmem:[#allocation2 + $0xa8] sm:$0xff] %vm29_vm0, %v436_v20  ;;  %v286_v27 = vpop.f32.mrf.mxu0  ;;  %v366_v28 = vpop.f32.mrf.mxu1 }
 0x128   :  { %v421_v29 = vadd.f32 %v286_v27, %v68_v21  ;;  %v437_v30 = vadd.f32 %v366_v28, %v84_v26  ;;  %v75_v27 = vld [vmem:[#allocation2 + $0x68] sm:$0xff] }
 0x129   :  { %v487_v32 = vld [vmem:[#allocation2 + $0x20] sm:$0xff]  ;;  %v288_v34 = vpop.f32.mrf.mxu0  ;;  %v368_v35 = vpop.f32.mrf.mxu1 }
 0x12a   :  { %v503_v33 = vld [vmem:[#allocation2 + $0xa0] sm:$0xff]  ;;  %519 = vst.msk [vmem:[%s1050_s2 + $0x20] sm:$0xff] %vm29_vm0, %v487_v32  ;;  %454 = vst.msk [vmem:[#allocation2 + $0x30] sm:$0xff] %vm29_vm0, %v421_v29  ;;  %v91_v32 = vld [vmem:[#allocation2 + $0xe8] sm:$0xff] }
 0x12b   :  { %535 = vst.msk [vmem:[%s1050_s2 + $0xa0] sm:$0xff] %vm29_vm0, %v503_v33  ;;  %470 = vst.msk [vmem:[#allocation2 + $0xb0] sm:$0xff] %vm29_vm0, %v437_v30  ;;  %v291_v37 = vpop.f32.mrf.mxu0  ;;  %v371_v38 = vpop.f32.mrf.mxu1 }
 0x12c   :  { %v422_v39 = vadd.f32 %v291_v37, %v69_v31  ;;  %v438_v40 = vadd.f32 %v371_v38, %v85_v36  ;;  %v76_v37 = vld [vmem:[#allocation2 + $0x70] sm:$0xff] }
 0x12d   :  { %v488_v42 = vld [vmem:[#allocation2 + $0x28] sm:$0xff]  ;;  %v293_v44 = vpop.f32.mrf.mxu0  ;;  %v373_v45 = vpop.f32.mrf.mxu1 }
 0x12e   :  { %v504_v43 = vld [vmem:[#allocation2 + $0xa8] sm:$0xff]  ;;  %520 = vst.msk [vmem:[%s1050_s2 + $0x28] sm:$0xff] %vm29_vm0, %v488_v42  ;;  %455 = vst.msk [vmem:[#allocation2 + $0x38] sm:$0xff] %vm29_vm0, %v422_v39  ;;  %v92_v42 = vld [vmem:[#allocation2 + $0xf0] sm:$0xff] }
 0x12f   :  { %536 = vst.msk [vmem:[%s1050_s2 + $0xa8] sm:$0xff] %vm29_vm0, %v504_v43  ;;  %471 = vst.msk [vmem:[#allocation2 + $0xb8] sm:$0xff] %vm29_vm0, %v438_v40  ;;  %v296_v47 = vpop.f32.mrf.mxu0  ;;  %v376_v48 = vpop.f32.mrf.mxu1 }
 0x130   :  { %v423_v49 = vadd.f32 %v296_v47, %v70_v41  ;;  %v439_v50 = vadd.f32 %v376_v48, %v86_v46  ;;  %v77_v47 = vld [vmem:[#allocation2 + $0x78] sm:$0xff] }
 0x131   :  { %v489_v52 = vld [vmem:[#allocation2 + $0x30] sm:$0xff]  ;;  %v298_v54 = vpop.f32.mrf.mxu0  ;;  %v378_v55 = vpop.f32.mrf.mxu1 }
 0x132   :  { %v505_v53 = vld [vmem:[#allocation2 + $0xb0] sm:$0xff]  ;;  %521 = vst.msk [vmem:[%s1050_s2 + $0x30] sm:$0xff] %vm29_vm0, %v489_v52  ;;  %456 = vst.msk [vmem:[#allocation2 + $0x40] sm:$0xff] %vm29_vm0, %v423_v49  ;;  %v93_v52 = vld [vmem:[#allocation2 + $0xf8] sm:$0xff] }
 0x133   :  { %537 = vst.msk [vmem:[%s1050_s2 + $0xb0] sm:$0xff] %vm29_vm0, %v505_v53  ;;  %472 = vst.msk [vmem:[#allocation2 + $0xc0] sm:$0xff] %vm29_vm0, %v439_v50  ;;  %v301_v57 = vpop.f32.mrf.mxu0  ;;  %v381_v58 = vpop.f32.mrf.mxu1 }
 0x134   :  { %v424_v59 = vadd.f32 %v301_v57, %v71_v51  ;;  %v440_v60 = vadd.f32 %v381_v58, %v87_v56 }
 0x135   :  { %v490_v62 = vld [vmem:[#allocation2 + $0x38] sm:$0xff]  ;;  %v303_v0 = vpop.f32.mrf.mxu0  ;;  %v383_v1 = vpop.f32.mrf.mxu1 }
 0x136   :  { %v506_v63 = vld [vmem:[#allocation2 + $0xb8] sm:$0xff]  ;;  %522 = vst.msk [vmem:[%s1050_s2 + $0x38] sm:$0xff] %vm29_vm0, %v490_v62  ;;  %457 = vst.msk [vmem:[#allocation2 + $0x48] sm:$0xff] %vm29_vm0, %v424_v59 }
 0x137   :  { %538 = vst.msk [vmem:[%s1050_s2 + $0xb8] sm:$0xff] %vm29_vm0, %v506_v63  ;;  %473 = vst.msk [vmem:[#allocation2 + $0xc8] sm:$0xff] %vm29_vm0, %v440_v60  ;;  %v306_v3 = vpop.f32.mrf.mxu0  ;;  %v386_v4 = vpop.f32.mrf.mxu1 }
 0x138   :  { %v425_v5 = vadd.f32 %v306_v3, %v72_v61  ;;  %v441_v6 = vadd.f32 %v386_v4, %v88_v2 }
 0x139   :  { %v491_v8 = vld [vmem:[#allocation2 + $0x40] sm:$0xff]  ;;  %v308_v10 = vpop.f32.mrf.mxu0  ;;  %v388_v11 = vpop.f32.mrf.mxu1 }
 0x13a   :  { %v507_v9 = vld [vmem:[#allocation2 + $0xc0] sm:$0xff]  ;;  %523 = vst.msk [vmem:[%s1050_s2 + $0x40] sm:$0xff] %vm29_vm0, %v491_v8  ;;  %458 = vst.msk [vmem:[#allocation2 + $0x50] sm:$0xff] %vm29_vm0, %v425_v5 }
 0x13b   :  { %539 = vst.msk [vmem:[%s1050_s2 + $0xc0] sm:$0xff] %vm29_vm0, %v507_v9  ;;  %474 = vst.msk [vmem:[#allocation2 + $0xd0] sm:$0xff] %vm29_vm0, %v441_v6  ;;  %v311_v13 = vpop.f32.mrf.mxu0  ;;  %v391_v14 = vpop.f32.mrf.mxu1 }
 0x13c   :  { %v426_v15 = vadd.f32 %v311_v13, %v73_v7  ;;  %v442_v16 = vadd.f32 %v391_v14, %v89_v12 }
 0x13d   :  { %v492_v18 = vld [vmem:[#allocation2 + $0x48] sm:$0xff]  ;;  %v313_v20 = vpop.f32.mrf.mxu0  ;;  %v393_v21 = vpop.f32.mrf.mxu1 }
 0x13e   :  { %v508_v19 = vld [vmem:[#allocation2 + $0xc8] sm:$0xff]  ;;  %524 = vst.msk [vmem:[%s1050_s2 + $0x48] sm:$0xff] %vm29_vm0, %v492_v18  ;;  %459 = vst.msk [vmem:[#allocation2 + $0x58] sm:$0xff] %vm29_vm0, %v426_v15 }
 0x13f   :  { %540 = vst.msk [vmem:[%s1050_s2 + $0xc8] sm:$0xff] %vm29_vm0, %v508_v19  ;;  %475 = vst.msk [vmem:[#allocation2 + $0xd8] sm:$0xff] %vm29_vm0, %v442_v16  ;;  %v316_v23 = vpop.f32.mrf.mxu0  ;;  %v396_v24 = vpop.f32.mrf.mxu1 }
 0x140   :  { %v427_v25 = vadd.f32 %v316_v23, %v74_v17  ;;  %v443_v26 = vadd.f32 %v396_v24, %v90_v22 }
 0x141   :  { %v493_v28 = vld [vmem:[#allocation2 + $0x50] sm:$0xff]  ;;  %v318_v30 = vpop.f32.mrf.mxu0  ;;  %v398_v31 = vpop.f32.mrf.mxu1 }
 0x142   :  { %v509_v29 = vld [vmem:[#allocation2 + $0xd0] sm:$0xff]  ;;  %525 = vst.msk [vmem:[%s1050_s2 + $0x50] sm:$0xff] %vm29_vm0, %v493_v28  ;;  %460 = vst.msk [vmem:[#allocation2 + $0x60] sm:$0xff] %vm29_vm0, %v427_v25 }
 0x143   :  { %541 = vst.msk [vmem:[%s1050_s2 + $0xd0] sm:$0xff] %vm29_vm0, %v509_v29  ;;  %476 = vst.msk [vmem:[#allocation2 + $0xe0] sm:$0xff] %vm29_vm0, %v443_v26  ;;  %v321_v33 = vpop.f32.mrf.mxu0  ;;  %v401_v34 = vpop.f32.mrf.mxu1 }
 0x144   :  { %v428_v35 = vadd.f32 %v321_v33, %v75_v27  ;;  %v444_v36 = vadd.f32 %v401_v34, %v91_v32 }
 0x145   :  { %v494_v38 = vld [vmem:[#allocation2 + $0x58] sm:$0xff]  ;;  %v323_v40 = vpop.f32.mrf.mxu0  ;;  %v403_v41 = vpop.f32.mrf.mxu1 }
 0x146   :  { %v510_v39 = vld [vmem:[#allocation2 + $0xd8] sm:$0xff]  ;;  %526 = vst.msk [vmem:[%s1050_s2 + $0x58] sm:$0xff] %vm29_vm0, %v494_v38  ;;  %461 = vst.msk [vmem:[#allocation2 + $0x68] sm:$0xff] %vm29_vm0, %v428_v35 }
 0x147   :  { %542 = vst.msk [vmem:[%s1050_s2 + $0xd8] sm:$0xff] %vm29_vm0, %v510_v39  ;;  %477 = vst.msk [vmem:[#allocation2 + $0xe8] sm:$0xff] %vm29_vm0, %v444_v36  ;;  %v326_v43 = vpop.f32.mrf.mxu0  ;;  %v406_v44 = vpop.f32.mrf.mxu1 }
 0x148   :  { %v429_v45 = vadd.f32 %v326_v43, %v76_v37  ;;  %v445_v46 = vadd.f32 %v406_v44, %v92_v42 }
 0x149   :  { %v495_v48 = vld [vmem:[#allocation2 + $0x60] sm:$0xff]  ;;  %v328_v50 = vpop.f32.mrf.mxu0  ;;  %v408_v51 = vpop.f32.mrf.mxu1 }
 0x14a   :  { %v511_v49 = vld [vmem:[#allocation2 + $0xe0] sm:$0xff]  ;;  %527 = vst.msk [vmem:[%s1050_s2 + $0x60] sm:$0xff] %vm29_vm0, %v495_v48  ;;  %462 = vst.msk [vmem:[#allocation2 + $0x70] sm:$0xff] %vm29_vm0, %v429_v45 }
 0x14b   :  { %543 = vst.msk [vmem:[%s1050_s2 + $0xe0] sm:$0xff] %vm29_vm0, %v511_v49  ;;  %478 = vst.msk [vmem:[#allocation2 + $0xf0] sm:$0xff] %vm29_vm0, %v445_v46  ;;  %v331_v53 = vpop.f32.mrf.mxu0  ;;  %v411_v54 = vpop.f32.mrf.mxu1 }
 0x14c   :  { %v430_v55 = vadd.f32 %v331_v53, %v77_v47  ;;  %v446_v56 = vadd.f32 %v411_v54, %v93_v52 }
 0x14d   :  { %v496_v57 = vld [vmem:[#allocation2 + $0x68] sm:$0xff]  ;;  %v333_v59 = vpop.f32.mrf.mxu0  ;;  %v413_v60 = vpop.f32.mrf.mxu1 }
 0x14e   :  { %v512_v58 = vld [vmem:[#allocation2 + $0xe8] sm:$0xff]  ;;  %528 = vst.msk [vmem:[%s1050_s2 + $0x68] sm:$0xff] %vm29_vm0, %v496_v57  ;;  %463 = vst.msk [vmem:[#allocation2 + $0x78] sm:$0xff] %vm29_vm0, %v430_v55 }
 0x14f   :  { %544 = vst.msk [vmem:[%s1050_s2 + $0xe8] sm:$0xff] %vm29_vm0, %v512_v58  ;;  %479 = vst.msk [vmem:[#allocation2 + $0xf8] sm:$0xff] %vm29_vm0, %v446_v56 }
 0x151   :  { %v497_v61 = vld [vmem:[#allocation2 + $0x70] sm:$0xff] }
 0x152   :  { %v513_v62 = vld [vmem:[#allocation2 + $0xf0] sm:$0xff]  ;;  %529 = vst.msk [vmem:[%s1050_s2 + $0x70] sm:$0xff] %vm29_vm0, %v497_v61 }
 0x153   :  { %545 = vst.msk [vmem:[%s1050_s2 + $0xf0] sm:$0xff] %vm29_vm0, %v513_v62 }
 0x155   :  { %v498_v63 = vld [vmem:[#allocation2 + $0x78] sm:$0xff] }
 0x156   :  { %v514_v0 = vld [vmem:[#allocation2 + $0xf8] sm:$0xff]  ;;  %530 = vst.msk [vmem:[%s1050_s2 + $0x78] sm:$0xff] %vm29_vm0, %v498_v63 }
 0x157   :  { %546 = vst.msk [vmem:[%s1050_s2 + $0xf8] sm:$0xff] %vm29_vm0, %v514_v0 }
 0x158   :  { %551 = vsyncpa [#allocation4], 1 }

</bundles_post_ra>
